<compile_context>
chip_gen: v5e
topology: v5e:2x2
jax: 0.10.0
libtpu: 0.0.40
codegen_flags: <defaults>
</compile_context>

<pallas_src>
import jax
import jax.numpy as jnp
from jax.experimental import pallas as pl
from jax.experimental.pallas import tpu as pltpu


def _round_up(x, m):
    return ((x + m - 1) // m) * m


def _cdiv(a, b):
    return -(-a // b)


def ncf_fused_kernel(u_ref, i_ref, wu_ref, wi_ref, b_ref, o_ref):
    """sigmoid(sum_f(u*w_u + i*w_i) + b_eff) in batch-on-lanes layout.

    u_ref, i_ref : (F, TL) f32 batch tiles (lane = batch, sublane = factor)
    wu_ref, wi_ref : (F, 1) fused effective weight halves (VMEM-resident)
    b_ref : (1, 1) fused effective bias
    o_ref : (1, TL) f32 lane-dense output tile
    """
    acc = u_ref[...] * wu_ref[...] + i_ref[...] * wi_ref[...]   # (F, TL) VPU
    s = jnp.sum(acc, axis=0, keepdims=True) + b_ref[...]        # (1, TL) sublane reduce
    # sigmoid(x) == 0.5 * (tanh(0.5 * x) + 1): single EUP push per vreg.
    o_ref[...] = 0.5 * (jnp.tanh(0.5 * s) + 1.0)


def ncf_forward(user, item, params, *, block_cols=65536, fold_scores=None):
    """Full NCF forward: XLA embedding gather + fused Pallas affine+sigmoid."""
    user_emb, item_emb, w1, b1, w2, b2, w3, b3 = params
    n_users, F = user_emb.shape
    n_items = item_emb.shape[0]
    B = user.shape[0]

    # --- algebraic fusion of the activation-free MLP (tiny one-off cost) ---
    w_eff = (w1 @ w2) @ w3                          # (2F, 1)
    b_eff = ((b1 @ w2 + b2) @ w3 + b3).reshape(1, 1)
    w_u = w_eff[:F]                                 # (F, 1) user half
    w_i = w_eff[F:]                                 # (F, 1) item half

    # Score fold is only a win when the batch dwarfs the table sizes.
    if fold_scores is None:
        fold_scores = B >= (n_users + n_items)

    if fold_scores:
        # Fold the effective weights into the tables -> 4 B/row per table.
        user_score = (user_emb @ w_u).reshape(1, n_users)
        item_score = (item_emb @ w_i).reshape(1, n_items)
        u = jnp.take(user_score, user, axis=1)      # (1, B)
        it = jnp.take(item_score, item, axis=1)     # (1, B)
        wu = jnp.ones((1, 1), jnp.float32)
        wi = jnp.ones((1, 1), jnp.float32)
        rows = 1
    else:
        # Gather directly in (F, B) lane-major layout (tables transposed once).
        u = jnp.take(user_emb.T, user, axis=1)      # (F, B)
        it = jnp.take(item_emb.T, item, axis=1)     # (F, B)
        wu, wi = w_u, w_i                           # (F, 1)
        rows = F

    # --- adaptive lane tile: big (amortizes step overhead), bounded padding -
    n_steps = _cdiv(B, block_cols)
    tl = _round_up(_cdiv(B, n_steps), 128)          # lane multiple, <= block_cols
    b_pad = n_steps * tl
    if b_pad != B:
        pad = ((0, 0), (0, b_pad - B))
        u = jnp.pad(u, pad)
        it = jnp.pad(it, pad)

    out = pl.pallas_call(
        ncf_fused_kernel,
        out_shape=jax.ShapeDtypeStruct((1, b_pad), jnp.float32),
        grid_spec=pltpu.PrefetchScalarGridSpec(
            num_scalar_prefetch=0,
            grid=(n_steps,),
            in_specs=[
                pl.BlockSpec((rows, tl), lambda g: (0, g)),   # u tile
                pl.BlockSpec((rows, tl), lambda g: (0, g)),   # i tile
                pl.BlockSpec((rows, 1), lambda g: (0, 0)),    # W_u (resident)
                pl.BlockSpec((rows, 1), lambda g: (0, 0)),    # W_i (resident)
                pl.BlockSpec((1, 1), lambda g: (0, 0)),       # b_eff (resident)
            ],
            out_specs=pl.BlockSpec((1, tl), lambda g: (0, g)),
        ),
        compiler_params=pltpu.CompilerParams(
            # "parallel" is safe on all gens; on v7x an explicit core split
            # (CORE_PARALLEL) could be tried once the grid has >= 2 steps.
            dimension_semantics=("parallel",),
            vmem_limit_bytes=32 * 1024 * 1024,
        ),
    )(u, it, wu, wi, b_eff)

    return out[0, :B].reshape(B, 1)


def init_params(key, n_users, n_items, n_factors=8):
    """Deterministic parameter init mimicking PyTorch defaults."""
    ks = jax.random.split(key, 8)

    # nn.Embedding default: N(0, 1)
    user_emb = jax.random.normal(ks[0], (n_users, n_factors), jnp.float32)
    item_emb = jax.random.normal(ks[1], (n_items, n_factors), jnp.float32)

    def linear(kw, kb, fan_in, fan_out):
        # nn.Linear default: U(-1/sqrt(fan_in), 1/sqrt(fan_in)); stored (in, out)
        bound = 1.0 / jnp.sqrt(jnp.float32(fan_in))
        w = jax.random.uniform(kw, (fan_in, fan_out), jnp.float32, -bound, bound)
        b = jax.random.uniform(kb, (1, fan_out), jnp.float32, -bound, bound)
        return w, b

    w1, b1 = linear(ks[2], ks[3], n_factors * 2, 64)
    w2, b2 = linear(ks[4], ks[5], 64, 32)
    w3, b3 = linear(ks[6], ks[7], 32, 1)
    return (user_emb, item_emb, w1, b1, w2, b2, w3, b3)


if __name__ == "__main__":
    key = jax.random.PRNGKey(0)
    n_users, n_items, n_factors, batch = 10, 12, 8, 8

    kp, ku, ki = jax.random.split(key, 3)
    params = init_params(kp, n_users, n_items, n_factors)
    user = jax.random.randint(ku, (batch,), 0, n_users, dtype=jnp.int32)
    item = jax.random.randint(ki, (batch,), 0, n_items, dtype=jnp.int32)

    # Default path (embedding tiles on lanes, in-kernel weighted reduce).
    out = jax.block_until_ready(jax.jit(ncf_forward)(user, item, params))

    # Also exercise the score-folded fast path (taken automatically when
    # B >= n_users + n_items).
    out_fold = jax.block_until_ready(
        jax.jit(lambda u_, i_, p_: ncf_forward(u_, i_, p_, fold_scores=True))(
            user, item, params))

    # Reference check: the original (unfused) 3-linear chain in plain JAX.
    user_emb, item_emb, w1, b1, w2, b2, w3, b3 = params
    z = jnp.concatenate([user_emb[user], item_emb[item]], axis=-1)
    ref = jax.nn.sigmoid(((z @ w1 + b1) @ w2 + b2) @ w3 + b3)

    assert out.shape == (batch, 1)
    assert jnp.allclose(out, ref, atol=1e-5, rtol=1e-5)
    assert jnp.allclose(out_fold, ref, atol=1e-5, rtol=1e-5)

    print("KERNEL_OK")
</pallas_src>

<mosaic_0001>
module attributes {stable_mosaic.version = 11 : i64} {
  func.func @ncf_fused_kernel(%arg0: i32, %arg1: memref<8x128xf32, #tpu.memory_space<vmem>>, %arg2: memref<8x128xf32, #tpu.memory_space<vmem>>, %arg3: memref<8x1xf32, #tpu.memory_space<vmem>>, %arg4: memref<8x1xf32, #tpu.memory_space<vmem>>, %arg5: memref<1x1xf32, #tpu.memory_space<vmem>>, %arg6: memref<1x128xf32, #tpu.memory_space<vmem>>) attributes {dimension_semantics = [#tpu.dimension_semantics<parallel>], iteration_bounds = array<i64: 1>, scalar_prefetch = 0 : i64, scratch_operands = 0 : i64, tpu.core_type = #tpu.core_type<tc>, window_params = [{transform_indices = @transform_0, window_bounds = array<i64: 8, 128>}, {transform_indices = @transform_1, window_bounds = array<i64: 8, 128>}, {pipeline_mode = #tpu.pipeline_mode<synchronous>, transform_indices = @transform_2, window_bounds = array<i64: 8, 1>}, {pipeline_mode = #tpu.pipeline_mode<synchronous>, transform_indices = @transform_3, window_bounds = array<i64: 8, 1>}, {pipeline_mode = #tpu.pipeline_mode<synchronous>, transform_indices = @transform_4, window_bounds = array<i64: 1, 1>}, {transform_indices = @transform_5, window_bounds = array<i64: 1, 128>}]} {
    %c0 = arith.constant 0 : index
    %c0_0 = arith.constant 0 : index
    %0 = vector.load %arg1[%c0, %c0_0] : memref<8x128xf32, #tpu.memory_space<vmem>>, vector<8x128xf32>
    %c0_1 = arith.constant 0 : index
    %c0_2 = arith.constant 0 : index
    %1 = vector.load %arg3[%c0_1, %c0_2] : memref<8x1xf32, #tpu.memory_space<vmem>>, vector<8x1xf32>
    %2 = vector.broadcast %1 : vector<8x1xf32> to vector<8x128xf32>
    %3 = arith.mulf %0, %2 : vector<8x128xf32>
    %c0_3 = arith.constant 0 : index
    %c0_4 = arith.constant 0 : index
    %4 = vector.load %arg2[%c0_3, %c0_4] : memref<8x128xf32, #tpu.memory_space<vmem>>, vector<8x128xf32>
    %c0_5 = arith.constant 0 : index
    %c0_6 = arith.constant 0 : index
    %5 = vector.load %arg4[%c0_5, %c0_6] : memref<8x1xf32, #tpu.memory_space<vmem>>, vector<8x1xf32>
    %6 = vector.broadcast %5 : vector<8x1xf32> to vector<8x128xf32>
    %7 = arith.mulf %4, %6 : vector<8x128xf32>
    %8 = arith.addf %3, %7 : vector<8x128xf32>
    %cst = arith.constant dense<0.000000e+00> : vector<128xf32>
    %9 = vector.multi_reduction <add>, %8, %cst [0] : vector<8x128xf32> to vector<128xf32>
    %10 = vector.shape_cast %9 : vector<128xf32> to vector<1x128xf32>
    %c0_7 = arith.constant 0 : index
    %c0_8 = arith.constant 0 : index
    %11 = vector.load %arg5[%c0_7, %c0_8] : memref<1x1xf32, #tpu.memory_space<vmem>>, vector<1x1xf32>
    %12 = vector.broadcast %11 : vector<1x1xf32> to vector<1x128xf32>
    %13 = arith.addf %10, %12 : vector<1x128xf32>
    %cst_9 = arith.constant 5.000000e-01 : f32
    %14 = vector.broadcast %cst_9 : f32 to vector<1x128xf32>
    %15 = arith.mulf %14, %13 : vector<1x128xf32>
    %16 = math.tanh %15 : vector<1x128xf32>
    %cst_10 = arith.constant 1.000000e+00 : f32
    %17 = vector.broadcast %cst_10 : f32 to vector<1x128xf32>
    %18 = arith.addf %16, %17 : vector<1x128xf32>
    %cst_11 = arith.constant 5.000000e-01 : f32
    %19 = vector.broadcast %cst_11 : f32 to vector<1x128xf32>
    %20 = arith.mulf %19, %18 : vector<1x128xf32>
    %c0_12 = arith.constant 0 : index
    %c0_13 = arith.constant 0 : index
    %21 = vector.load %arg6[%c0_12, %c0_13] : memref<1x128xf32, #tpu.memory_space<vmem>>, vector<1x128xf32>
    tpu.vector_store %arg6[%c0_12, %c0_13], %20 {strides = array<i32>} : memref<1x128xf32, #tpu.memory_space<vmem>>, vector<1x128xf32>,
    return
  }
  func.func @transform_0(%arg0: i32) -> (i32, i32) {
    %c0_i32 = arith.constant 0 : i32
    %c0_i32_0 = arith.constant 0 : i32
    return %c0_i32, %arg0 : i32, i32
  }
  func.func @transform_1(%arg0: i32) -> (i32, i32) {
    %c0_i32 = arith.constant 0 : i32
    %c0_i32_0 = arith.constant 0 : i32
    return %c0_i32, %arg0 : i32, i32
  }
  func.func @transform_2(%arg0: i32) -> (i32, i32) {
    %c0_i32 = arith.constant 0 : i32
    %c0_i32_0 = arith.constant 0 : i32
    %c0_i32_1 = arith.constant 0 : i32
    return %c0_i32, %c0_i32_0 : i32, i32
  }
  func.func @transform_3(%arg0: i32) -> (i32, i32) {
    %c0_i32 = arith.constant 0 : i32
    %c0_i32_0 = arith.constant 0 : i32
    %c0_i32_1 = arith.constant 0 : i32
    return %c0_i32, %c0_i32_0 : i32, i32
  }
  func.func @transform_4(%arg0: i32) -> (i32, i32) {
    %c0_i32 = arith.constant 0 : i32
    %c0_i32_0 = arith.constant 0 : i32
    %c0_i32_1 = arith.constant 0 : i32
    return %c0_i32, %c0_i32_0 : i32, i32
  }
  func.func @transform_5(%arg0: i32) -> (i32, i32) {
    %c0_i32 = arith.constant 0 : i32
    %c0_i32_0 = arith.constant 0 : i32
    return %c0_i32, %arg0 : i32, i32
  }
}

</mosaic_0001>

<bundles_post_ra>
// kernel: ncf_forward.1
= control target key start
LH: loop header
LB: loop body
LE: loop exit
PB: predicated region body
PF: predicated region fallthrough
CT: control target
= control target key end

     0   :  { %v67_v0 = vmov 0   ;;  %s116_s2 = inlined_call_operand.vmem [shape: f32[8,1], index: 2, kind: input, shape index: {}]   ;;  %s117_s4 = inlined_call_operand.<no memory space> [shape: f32[1,1], index: 4, kind: input, shape index: {}]   ;;  %s118_s3 = inlined_call_operand.vmem [shape: f32[8,1], index: 3, kind: input, shape index: {}]   ;;  %s119_s0 = inlined_call_operand.vmem [shape: f32[8,128], index: 0, kind: input, shape index: {}]   ;;  %s120_s1 = inlined_call_operand.vmem [shape: f32[8,128], index: 1, kind: input, shape index: {}]   ;;  %s121_s5 = inlined_call_operand.vmem [shape: f32[1,128], index: 5, kind: output, shape index: {}]  }
   0x1   :  { %63 = vset.pattern.permute.xlu0 %v67_v0  ;;  %v23_v1 = vld [vmem:[%s116_s2] sm:$0xff]  ;;  %64 = vset.pattern.permute.xlu1 %v67_v0  ;;  %v10_v2 = vstv %s117_s4 }
   0x2   :  { %26 = vperm.xlu0 %63, %v23_v1   ;;  %11 = vst [vmem:[#allocation2] sm:$0x1] %v10_v2  ;;  %v31_v3 = vld [vmem:[%s118_s3] sm:$0xff] }
   0x3   :  { %v22_v6 = vld [vmem:[%s119_s0] sm:$0xff] }
   0x4   :  { %v30_v7 = vld [vmem:[%s120_s1] sm:$0xff] }
   0x9   :  { %v45_v4 = vld [vmem:[#allocation2] sm:$0x1] }
   0xa   :  { %34 = vperm.xlu0 %63, %v31_v3   ;;  %48 = vperm.xlu1 %64, %v45_v4  }
  0x74   :  { %v27_v5 = vpop.permute.xlu0 %26 }
  0x75   :  { %v29_v9 = vmul.f32 %v27_v5, %v22_v6 }
  0x7c   :  { %v35_v8 = vpop.permute.xlu0 %34  ;;  %v49_v15 = vpop.permute.xlu1 %48 }
  0x7d   :  { %v37_v10 = vmul.f32 %v35_v8, %v30_v7  ;;  %v51_v18 = vperm.slane %v49_v15, 0 }
  0x7f   :  { %v38_v11 = vadd.f32 %v37_v10, %v29_v9 }
  0x81   :  { %v39_v12 = vrot.slane %v38_v11, 4 }
  0x83   :  { %v40_v13 = vadd.f32 %v39_v12, %v38_v11 }
  0x85   :  { %v41_v14 = vrot.slane %v40_v13, 2 }
  0x87   :  { %v42_v16 = vadd.f32 %v41_v14, %v40_v13 }
  0x89   :  { %v43_v17 = vrot.slane %v42_v16, 1 }
  0x8b   :  { %v44_v19 = vadd.f32 %v43_v17, %v42_v16 }
  0x8d   :  { %v52_v20 = vadd.f32 %v51_v18, %v44_v19 }
  0x8f   :  { %v53_v21 = vmul.f32 0.5, %v52_v20 }
  0x91   :  { %65 = vtanh.f32 %v53_v21 }
  0x97   :  { %v66_v22 = vpop.eup %65 }
  0x98   :  { %v55_v23 = vadd.f32 1.0, %v66_v22 }
  0x9a   :  { %v56_v24 = vmul.f32 0.5, %v55_v23 }
  0x9c   :  { %57 = vst [vmem:[%s121_s5] sm:$0x1] %v56_v24 }

</bundles_post_ra>
